<compile_context>
chip_gen: v7x
topology: tpu7x:2x2x1
jax: 0.10.0
libtpu: 0.0.40
codegen_flags: <defaults>
</compile_context>

<pallas_src>
import functools

import jax
import jax.numpy as jnp
from jax import lax
from jax.experimental import pallas as pl
from jax.experimental.pallas import tpu as pltpu


# --------------------------------------------------------------------------
# Pallas kernel: fused MLP for one batch tile (weights resident in VMEM)
# --------------------------------------------------------------------------
def _mlp_kernel(*refs, n_hidden, should_sigmoid):
    if n_hidden > 0:
        (x_ref, w_in_ref, b_in_ref, wh_ref, bh_ref,
         w_out_ref, b_out_ref, o_ref) = refs
    else:
        (x_ref, w_in_ref, b_in_ref, w_out_ref, b_out_ref, o_ref) = refs

    # Input layer: cast x to bf16 in-kernel (VPU), MXU matmul, f32 accumulate.
    h = jnp.dot(x_ref[...].astype(w_in_ref.dtype), w_in_ref[...],
                preferred_element_type=jnp.float32)
    h = jnp.maximum(h + b_in_ref[...], 0.0)

    # Hidden layers (short fixed trip count -> unrolled fori_loop).
    if n_hidden > 0:
        def body(l, h):
            a = jnp.dot(h.astype(wh_ref.dtype), wh_ref[l],
                        preferred_element_type=jnp.float32)
            return jnp.maximum(a + bh_ref[l], 0.0)
        h = lax.fori_loop(0, n_hidden, body, h, unroll=True)

    # Output layer
    y = jnp.dot(h.astype(w_out_ref.dtype), w_out_ref[...],
                preferred_element_type=jnp.float32)
    y = y + b_out_ref[...]

    if should_sigmoid:
        # exp + reciprocal both land on the otherwise-idle EUP slot
        y = pl.reciprocal(1.0 + jnp.exp(-y), approx=True)

    o_ref[...] = y.astype(o_ref.dtype)


# --------------------------------------------------------------------------
# Helpers
# --------------------------------------------------------------------------
def _round_up(n, m):
    return ((n + m - 1) // m) * m


def _pad_to(x, shape):
    pads = [(0, t - s) for s, t in zip(x.shape, shape)]
    if all(p == (0, 0) for p in pads):
        return x
    return jnp.pad(x, pads)


def _choose_tile_b(batch):
    """Batch tile: multiple of 16, capped at 512; split into >=2 grid steps
    when the batch is large enough so both v7x TensorCores get work."""
    if batch <= 32:
        return _round_up(max(batch, 1), 16)
    tile = _round_up(-(-batch // 2), 16)     # ceil(batch / 2)
    return min(tile, 512)


def _vmem_cap_bytes():
    """Generation-aware VMEM cap with headroom below physical capacity."""
    phys = 128 * 2**20
    try:
        info = pltpu.get_tpu_info()
        phys = int(getattr(info, "vmem_capacity_bytes", phys) or phys)
    except Exception:
        pass
    if phys <= 64 * 2**20:          # v7x-class: 64 MiB per TensorCore
        return 52 * 2**20
    return 100 * 2**20              # v5e / v6e: 128 MiB physical


# --------------------------------------------------------------------------
# One-time parameter prep: pad feature dims to 128, cast weights to bf16.
# (Hoisted out of the per-call forward path.)
# --------------------------------------------------------------------------
def prepare_params(params):
    w_in, b_in = params["w_in"], params["b_in"]
    w_h, b_h = params["w_h"], params["b_h"]
    w_out, b_out = params["w_out"], params["b_out"]

    in_size, hidden_size = w_in.shape
    out_size = w_out.shape[1]
    n_hidden = w_h.shape[0]

    i_pad = _round_up(in_size, 128)
    h_pad = _round_up(hidden_size, 128)
    o_pad = _round_up(out_size, 128)

    bf16 = jnp.bfloat16
    prep = {
        "in_size": in_size, "hidden_size": hidden_size, "out_size": out_size,
        "i_pad": i_pad, "h_pad": h_pad, "o_pad": o_pad, "n_hidden": n_hidden,
        "w_in": _pad_to(w_in, (i_pad, h_pad)).astype(bf16),
        "b_in": _pad_to(b_in, (1, h_pad)).astype(jnp.float32),
        "w_out": _pad_to(w_out, (h_pad, o_pad)).astype(bf16),
        "b_out": _pad_to(b_out, (1, o_pad)).astype(jnp.float32),
    }
    if n_hidden > 0:
        prep["w_h"] = _pad_to(w_h, (n_hidden, h_pad, h_pad)).astype(bf16)
        prep["b_h"] = _pad_to(b_h, (n_hidden, 1, h_pad)).astype(jnp.float32)
    else:
        prep["w_h"] = None
        prep["b_h"] = None
    return jax.tree_util.tree_map(
        lambda a: jax.block_until_ready(a) if isinstance(a, jax.Array) else a,
        prep)


# --------------------------------------------------------------------------
# Forward: only x padding remains per call; weights come pre-padded.
# --------------------------------------------------------------------------
def feedforward_network(x, prep, *, should_sigmoid):
    batch, in_size = x.shape
    assert in_size == prep["in_size"]
    i_pad, h_pad, o_pad = prep["i_pad"], prep["h_pad"], prep["o_pad"]
    n_hidden = prep["n_hidden"]

    tile_b = _choose_tile_b(batch)
    b_pad = _round_up(batch, tile_b)
    grid = (b_pad // tile_b,)

    # x stays f32; pad only if needed (bf16 cast happens inside the kernel).
    x_in = _pad_to(x.astype(jnp.float32), (b_pad, i_pad))

    x_spec = pl.BlockSpec((tile_b, i_pad), lambda i: (i, 0))
    w_in_spec = pl.BlockSpec((i_pad, h_pad), lambda i: (0, 0))
    b_in_spec = pl.BlockSpec((1, h_pad), lambda i: (0, 0))
    w_out_spec = pl.BlockSpec((h_pad, o_pad), lambda i: (0, 0))
    b_out_spec = pl.BlockSpec((1, o_pad), lambda i: (0, 0))
    out_spec = pl.BlockSpec((tile_b, o_pad), lambda i: (i, 0))

    if n_hidden > 0:
        w_h_spec = pl.BlockSpec((n_hidden, h_pad, h_pad), lambda i: (0, 0, 0))
        b_h_spec = pl.BlockSpec((n_hidden, 1, h_pad), lambda i: (0, 0, 0))
        inputs = (x_in, prep["w_in"], prep["b_in"], prep["w_h"], prep["b_h"],
                  prep["w_out"], prep["b_out"])
        in_specs = [x_spec, w_in_spec, b_in_spec, w_h_spec, b_h_spec,
                    w_out_spec, b_out_spec]
        hidden_bytes = prep["w_h"].size * 2 + prep["b_h"].size * 4
    else:
        inputs = (x_in, prep["w_in"], prep["b_in"],
                  prep["w_out"], prep["b_out"])
        in_specs = [x_spec, w_in_spec, b_in_spec, w_out_spec, b_out_spec]
        hidden_bytes = 0

    # VMEM budget: resident weights + double-buffered f32 x/out tiles +
    # activation headroom + compiler scratch margin, under a per-generation cap.
    resident = (prep["w_in"].size + prep["w_out"].size) * 2 + hidden_bytes \
        + (prep["b_in"].size + prep["b_out"].size) * 4
    io_tiles = 2 * (tile_b * i_pad * 4 + tile_b * o_pad * 4)
    act = 6 * tile_b * h_pad * 4
    cap = _vmem_cap_bytes()
    need = resident + io_tiles + act + (4 << 20)
    vmem_limit = int(min(max(need, 16 << 20), cap))
    # TODO(synk): if `need > cap`, switch w_h to memory_space=pl.ANY and
    # double-buffer one (h_pad, h_pad) slab per layer instead of asserting.

    kernel = functools.partial(_mlp_kernel,
                               n_hidden=n_hidden,
                               should_sigmoid=should_sigmoid)

    out_padded = pl.pallas_call(
        kernel,
        out_shape=jax.ShapeDtypeStruct((b_pad, o_pad), jnp.float32),
        grid=grid,
        in_specs=in_specs,
        out_specs=out_spec,
        compiler_params=pltpu.CompilerParams(
            dimension_semantics=("parallel",),
            vmem_limit_bytes=vmem_limit),
    )(*inputs)

    if (b_pad, o_pad) != (batch, prep["out_size"]):
        out_padded = out_padded[:batch, :prep["out_size"]]
    return out_padded


# --------------------------------------------------------------------------
# Deterministic parameter construction (matches randomize(): xavier_uniform
# weights, zero biases).  spectral_norm for the should_sigmoid=False case is
# applied once as JAX-side weight prep (power iteration), not per-forward.
# --------------------------------------------------------------------------
def _xavier_uniform(key, fan_in, fan_out):
    bound = (6.0 / (fan_in + fan_out)) ** 0.5
    return jax.random.uniform(key, (fan_in, fan_out), jnp.float32, -bound, bound)


def _spectral_normalize(w, n_iters=20):
    """Divide w by its largest singular value (nn.utils.spectral_norm)."""
    u = jnp.ones((w.shape[1],), jnp.float32)
    v = w @ u
    for _ in range(n_iters):
        v = w @ u
        v = v / (jnp.linalg.norm(v) + 1e-12)
        u = w.T @ v
        u = u / (jnp.linalg.norm(u) + 1e-12)
    sigma = v @ (w @ u)
    return w / sigma


def make_params(key, input_size, hidden_size, output_size, n_layers,
                should_sigmoid):
    keys = jax.random.split(key, n_layers + 1)
    w_in = _xavier_uniform(keys[0], input_size, hidden_size)
    w_hs = [
        _xavier_uniform(keys[1 + i], hidden_size, hidden_size)
        for i in range(n_layers - 1)
    ]
    w_out = _xavier_uniform(keys[n_layers], hidden_size, output_size)

    if not should_sigmoid:
        # spectral_norm wraps input + hidden layers (not the output layer)
        w_in = _spectral_normalize(w_in)
        w_hs = [_spectral_normalize(w) for w in w_hs]

    if n_layers - 1 > 0:
        w_h = jnp.stack(w_hs, axis=0)                      # (L-1, H, H)
        b_h = jnp.zeros((n_layers - 1, 1, hidden_size), jnp.float32)
    else:
        w_h = jnp.zeros((0, hidden_size, hidden_size), jnp.float32)
        b_h = jnp.zeros((0, 1, hidden_size), jnp.float32)

    return {
        "w_in": w_in,
        "b_in": jnp.zeros((1, hidden_size), jnp.float32),
        "w_h": w_h,
        "b_h": b_h,
        "w_out": w_out,
        "b_out": jnp.zeros((1, output_size), jnp.float32),
    }


# --------------------------------------------------------------------------
# Pure-JAX reference (mirrors the kernel's bf16-matmul / f32-accumulate split)
# --------------------------------------------------------------------------
def _reference(x, params, should_sigmoid):
    bf = jnp.bfloat16
    h = jnp.dot(x.astype(bf), params["w_in"].astype(bf),
                preferred_element_type=jnp.float32)
    h = jnp.maximum(h + params["b_in"], 0.0)
    for l in range(params["w_h"].shape[0]):
        h = jnp.dot(h.astype(bf), params["w_h"][l].astype(bf),
                    preferred_element_type=jnp.float32)
        h = jnp.maximum(h + params["b_h"][l], 0.0)
    y = jnp.dot(h.astype(bf), params["w_out"].astype(bf),
                preferred_element_type=jnp.float32) + params["b_out"]
    if should_sigmoid:
        y = jax.nn.sigmoid(y)
    return y


if __name__ == "__main__":
    batch = 8
    input_size, hidden_size, output_size = 16, 32, 8

    key = jax.random.PRNGKey(0)
    kx, kp1, kp2 = jax.random.split(key, 3)
    x = jax.random.normal(kx, (batch, input_size), jnp.float32)

    # Case 1: 3 layers, sigmoid head (discriminator-style observer)
    params1 = make_params(kp1, input_size, hidden_size, output_size,
                          n_layers=3, should_sigmoid=True)
    prep1 = prepare_params(params1)          # one-time weight pad + bf16 cast
    out1 = feedforward_network(x, prep1, should_sigmoid=True)
    out1 = jax.block_until_ready(out1)
    ref1 = _reference(x, params1, True)
    assert out1.shape == (batch, output_size)
    assert jnp.allclose(out1, ref1, atol=1e-2, rtol=1e-2), "mismatch (sigmoid)"

    # Case 2: single layer (no hidden stack), spectral-norm path, no sigmoid
    params2 = make_params(kp2, input_size, hidden_size, output_size,
                          n_layers=1, should_sigmoid=False)
    prep2 = prepare_params(params2)
    out2 = feedforward_network(x, prep2, should_sigmoid=False)
    out2 = jax.block_until_ready(out2)
    ref2 = _reference(x, params2, False)
    assert out2.shape == (batch, output_size)
    assert jnp.allclose(out2, ref2, atol=1e-2, rtol=1e-2), "mismatch (no sigmoid)"

    print("KERNEL_OK")
</pallas_src>

<mosaic_0001>
module attributes {stable_mosaic.version = 11 : i64} {
  func.func @_mlp_kernel(%arg0: i32, %arg1: memref<16x128xf32, #tpu.memory_space<vmem>>, %arg2: memref<128x128xbf16, #tpu.memory_space<vmem>>, %arg3: memref<1x128xf32, #tpu.memory_space<vmem>>, %arg4: memref<2x128x128xbf16, #tpu.memory_space<vmem>>, %arg5: memref<2x1x128xf32, #tpu.memory_space<vmem>>, %arg6: memref<128x128xbf16, #tpu.memory_space<vmem>>, %arg7: memref<1x128xf32, #tpu.memory_space<vmem>>, %arg8: memref<16x128xf32, #tpu.memory_space<vmem>>) attributes {dimension_semantics = [#tpu.dimension_semantics<parallel>], iteration_bounds = array<i64: 1>, scalar_prefetch = 0 : i64, scratch_operands = 0 : i64, tpu.core_type = #tpu.core_type<tc>, window_params = [{transform_indices = @transform_0, window_bounds = array<i64: 16, 128>}, {pipeline_mode = #tpu.pipeline_mode<synchronous>, transform_indices = @transform_1, window_bounds = array<i64: 128, 128>}, {pipeline_mode = #tpu.pipeline_mode<synchronous>, transform_indices = @transform_2, window_bounds = array<i64: 1, 128>}, {pipeline_mode = #tpu.pipeline_mode<synchronous>, transform_indices = @transform_3, window_bounds = array<i64: 2, 128, 128>}, {pipeline_mode = #tpu.pipeline_mode<synchronous>, transform_indices = @transform_4, window_bounds = array<i64: 2, 1, 128>}, {pipeline_mode = #tpu.pipeline_mode<synchronous>, transform_indices = @transform_5, window_bounds = array<i64: 128, 128>}, {pipeline_mode = #tpu.pipeline_mode<synchronous>, transform_indices = @transform_6, window_bounds = array<i64: 1, 128>}, {transform_indices = @transform_7, window_bounds = array<i64: 16, 128>}]} {
    %c0 = arith.constant 0 : index
    %c0_0 = arith.constant 0 : index
    %0 = vector.load %arg1[%c0, %c0_0] : memref<16x128xf32, #tpu.memory_space<vmem>>, vector<16x128xf32>
    %1 = arith.truncf %0 : vector<16x128xf32> to vector<16x128xbf16>
    %c0_1 = arith.constant 0 : index
    %c0_2 = arith.constant 0 : index
    %2 = vector.load %arg2[%c0_1, %c0_2] : memref<128x128xbf16, #tpu.memory_space<vmem>>, vector<128x128xbf16>
    %cst = arith.constant dense<0.000000e+00> : vector<16x128xf32>
    %3 = tpu.matmul %1, %2, %cst {dimension_numbers = #tpu.dot_dimension_numbers<[1], [0], [0], [1], [0, 0, 1, 1], [], []>} : vector<16x128xbf16>, vector<128x128xbf16>, vector<16x128xf32> -> vector<16x128xf32>
    %c0_3 = arith.constant 0 : index
    %c0_4 = arith.constant 0 : index
    %4 = vector.load %arg3[%c0_3, %c0_4] : memref<1x128xf32, #tpu.memory_space<vmem>>, vector<1x128xf32>
    %5 = vector.broadcast %4 : vector<1x128xf32> to vector<16x128xf32>
    %6 = arith.addf %3, %5 : vector<16x128xf32>
    %cst_5 = arith.constant 0.000000e+00 : f32
    %7 = vector.broadcast %cst_5 : f32 to vector<16x128xf32>
    %8 = arith.maximumf %6, %7 : vector<16x128xf32>
    %c0_i32 = arith.constant 0 : i32
    %9 = arith.truncf %8 : vector<16x128xf32> to vector<16x128xbf16>
    %10 = arith.index_cast %c0_i32 : i32 to index
    %c0_6 = arith.constant 0 : index
    %c0_7 = arith.constant 0 : index
    %11 = vector.load %arg4[%10, %c0_6, %c0_7] : memref<2x128x128xbf16, #tpu.memory_space<vmem>>, vector<1x128x128xbf16>
    %12 = vector.shape_cast %11 : vector<1x128x128xbf16> to vector<128x128xbf16>
    %cst_8 = arith.constant dense<0.000000e+00> : vector<16x128xf32>
    %13 = tpu.matmul %9, %12, %cst_8 {dimension_numbers = #tpu.dot_dimension_numbers<[1], [0], [0], [1], [0, 0, 1, 1], [], []>} : vector<16x128xbf16>, vector<128x128xbf16>, vector<16x128xf32> -> vector<16x128xf32>
    %14 = arith.index_cast %c0_i32 : i32 to index
    %c0_9 = arith.constant 0 : index
    %c0_10 = arith.constant 0 : index
    %15 = vector.load %arg5[%14, %c0_9, %c0_10] : memref<2x1x128xf32, #tpu.memory_space<vmem>>, vector<1x1x128xf32>
    %16 = vector.shape_cast %15 : vector<1x1x128xf32> to vector<1x128xf32>
    %17 = vector.broadcast %16 : vector<1x128xf32> to vector<16x128xf32>
    %18 = arith.addf %13, %17 : vector<16x128xf32>
    %cst_11 = arith.constant 0.000000e+00 : f32
    %19 = vector.broadcast %cst_11 : f32 to vector<16x128xf32>
    %20 = arith.maximumf %18, %19 : vector<16x128xf32>
    %c1_i32 = arith.constant 1 : i32
    %21 = arith.truncf %20 : vector<16x128xf32> to vector<16x128xbf16>
    %22 = arith.index_cast %c1_i32 : i32 to index
    %c0_12 = arith.constant 0 : index
    %c0_13 = arith.constant 0 : index
    %23 = vector.load %arg4[%22, %c0_12, %c0_13] : memref<2x128x128xbf16, #tpu.memory_space<vmem>>, vector<1x128x128xbf16>
    %24 = vector.shape_cast %23 : vector<1x128x128xbf16> to vector<128x128xbf16>
    %cst_14 = arith.constant dense<0.000000e+00> : vector<16x128xf32>
    %25 = tpu.matmul %21, %24, %cst_14 {dimension_numbers = #tpu.dot_dimension_numbers<[1], [0], [0], [1], [0, 0, 1, 1], [], []>} : vector<16x128xbf16>, vector<128x128xbf16>, vector<16x128xf32> -> vector<16x128xf32>
    %26 = arith.index_cast %c1_i32 : i32 to index
    %c0_15 = arith.constant 0 : index
    %c0_16 = arith.constant 0 : index
    %27 = vector.load %arg5[%26, %c0_15, %c0_16] : memref<2x1x128xf32, #tpu.memory_space<vmem>>, vector<1x1x128xf32>
    %28 = vector.shape_cast %27 : vector<1x1x128xf32> to vector<1x128xf32>
    %29 = vector.broadcast %28 : vector<1x128xf32> to vector<16x128xf32>
    %30 = arith.addf %25, %29 : vector<16x128xf32>
    %cst_17 = arith.constant 0.000000e+00 : f32
    %31 = vector.broadcast %cst_17 : f32 to vector<16x128xf32>
    %32 = arith.maximumf %30, %31 : vector<16x128xf32>
    %c2_i32 = arith.constant 2 : i32
    %33 = arith.truncf %32 : vector<16x128xf32> to vector<16x128xbf16>
    %c0_18 = arith.constant 0 : index
    %c0_19 = arith.constant 0 : index
    %34 = vector.load %arg6[%c0_18, %c0_19] : memref<128x128xbf16, #tpu.memory_space<vmem>>, vector<128x128xbf16>
    %cst_20 = arith.constant dense<0.000000e+00> : vector<16x128xf32>
    %35 = tpu.matmul %33, %34, %cst_20 {dimension_numbers = #tpu.dot_dimension_numbers<[1], [0], [0], [1], [0, 0, 1, 1], [], []>} : vector<16x128xbf16>, vector<128x128xbf16>, vector<16x128xf32> -> vector<16x128xf32>
    %c0_21 = arith.constant 0 : index
    %c0_22 = arith.constant 0 : index
    %36 = vector.load %arg7[%c0_21, %c0_22] : memref<1x128xf32, #tpu.memory_space<vmem>>, vector<1x128xf32>
    %37 = vector.broadcast %36 : vector<1x128xf32> to vector<16x128xf32>
    %38 = arith.addf %35, %37 : vector<16x128xf32>
    %cst_23 = arith.constant 0.000000e+00 : f32
    %39 = vector.broadcast %cst_23 : f32 to vector<16x128xf32>
    %40 = arith.subf %39, %38 : vector<16x128xf32>
    %41 = math.exp %40 : vector<16x128xf32>
    %cst_24 = arith.constant 1.000000e+00 : f32
    %42 = vector.broadcast %cst_24 : f32 to vector<16x128xf32>
    %43 = arith.addf %42, %41 : vector<16x128xf32>
    %44 = tpu.reciprocal %43 {approx = true} : vector<16x128xf32> -> vector<16x128xf32>
    %c0_25 = arith.constant 0 : index
    %c0_26 = arith.constant 0 : index
    %45 = vector.load %arg8[%c0_25, %c0_26] : memref<16x128xf32, #tpu.memory_space<vmem>>, vector<16x128xf32>
    tpu.vector_store %arg8[%c0_25, %c0_26], %44 {strides = array<i32>} : memref<16x128xf32, #tpu.memory_space<vmem>>, vector<16x128xf32>,
    return
  }
  func.func @transform_0(%arg0: i32) -> (i32, i32) {
    %c0_i32 = arith.constant 0 : i32
    %c0_i32_0 = arith.constant 0 : i32
    return %arg0, %c0_i32 : i32, i32
  }
  func.func @transform_1(%arg0: i32) -> (i32, i32) {
    %c0_i32 = arith.constant 0 : i32
    %c0_i32_0 = arith.constant 0 : i32
    %c0_i32_1 = arith.constant 0 : i32
    return %c0_i32, %c0_i32_0 : i32, i32
  }
  func.func @transform_2(%arg0: i32) -> (i32, i32) {
    %c0_i32 = arith.constant 0 : i32
    %c0_i32_0 = arith.constant 0 : i32
    %c0_i32_1 = arith.constant 0 : i32
    return %c0_i32, %c0_i32_0 : i32, i32
  }
  func.func @transform_3(%arg0: i32) -> (i32, i32, i32) {
    %c0_i32 = arith.constant 0 : i32
    %c0_i32_0 = arith.constant 0 : i32
    %c0_i32_1 = arith.constant 0 : i32
    %c0_i32_2 = arith.constant 0 : i32
    return %c0_i32, %c0_i32_0, %c0_i32_1 : i32, i32, i32
  }
  func.func @transform_4(%arg0: i32) -> (i32, i32, i32) {
    %c0_i32 = arith.constant 0 : i32
    %c0_i32_0 = arith.constant 0 : i32
    %c0_i32_1 = arith.constant 0 : i32
    %c0_i32_2 = arith.constant 0 : i32
    return %c0_i32, %c0_i32_0, %c0_i32_1 : i32, i32, i32
  }
  func.func @transform_5(%arg0: i32) -> (i32, i32) {
    %c0_i32 = arith.constant 0 : i32
    %c0_i32_0 = arith.constant 0 : i32
    %c0_i32_1 = arith.constant 0 : i32
    return %c0_i32, %c0_i32_0 : i32, i32
  }
  func.func @transform_6(%arg0: i32) -> (i32, i32) {
    %c0_i32 = arith.constant 0 : i32
    %c0_i32_0 = arith.constant 0 : i32
    %c0_i32_1 = arith.constant 0 : i32
    return %c0_i32, %c0_i32_0 : i32, i32
  }
  func.func @transform_7(%arg0: i32) -> (i32, i32) {
    %c0_i32 = arith.constant 0 : i32
    %c0_i32_0 = arith.constant 0 : i32
    return %arg0, %c0_i32 : i32, i32
  }
}

</mosaic_0001>

<bundles_post_ra>
// kernel: tpu_custom_call.1
= control target key start
LH: loop header
LB: loop body
LE: loop exit
PB: predicated region body
PF: predicated region fallthrough
CT: control target
= control target key end

     0   :  { %12 = vsyncpa [#allocation3], 0  ;;  %s1083_s0 = inlined_call_operand.hbm [shape: f32[16,128], index: 0, kind: input, shape index: {}]   ;;  %s1084_s1 = inlined_call_operand.hbm [shape: bf16[128,128], index: 1, kind: input, shape index: {}]   ;;  %s1085_s2 = inlined_call_operand.vmem [shape: f32[1,128], index: 2, kind: input, shape index: {}]   ;;  %s1086_s3 = inlined_call_operand.hbm [shape: bf16[2,128,128], index: 3, kind: input, shape index: {}]   ;;  %s1087_s4 = inlined_call_operand.vmem [shape: f32[2,1,128], index: 4, kind: input, shape index: {}]   ;;  %s1088_s5 = inlined_call_operand.hbm [shape: bf16[128,128], index: 5, kind: input, shape index: {}]   ;;  %s1089_s6 = inlined_call_operand.vmem [shape: f32[1,128], index: 6, kind: input, shape index: {}]   ;;  %s1090_s7 = inlined_call_operand.hbm [shape: f32[16,128], index: 7, kind: output, shape index: {}]  }
   0x1   :  { %13 = vsyncpa [#allocation6], 0 }
   0x2   :  { %14 = vsyncpa [#allocation9], 0 }
   0x3   :  { %15 = vsyncpa [#allocation4], 0  ;;  %s898_s24 = smov [#allocation5]   ;;  %s780_s28 = scalar_lea.hbm %s1084_s1, 1024 }
   0x4   :  { %s33_s25 = sshll.u32 %s898_s24, 4  ;;  %p781_p0 = scmp.ne.s32.totalorder %s1084_s1, %s780_s28  ;;  %s34_s25 = int_to_ptr.vmem [resolvable:$true] %s33_s25 }
   0x5   :  { %p784_p1 = scmp.lt.u32.totalorder %s780_s28, %s1084_s1 }
   0x7   :  { %p786_p2 = pnand %p784_p1, %p781_p0 }
   0x9   :  { %789 = shalt.err (!%p786_p2)
}
   0xa   :  { %s790_s10 = scalar_lea.vmem %s34_s25, 1024  ;;  %p795_p4 = scmp.lt.s32.totalorder %s34_s25, %s34_s25 }
   0xb   :  { %p791_p3 = scmp.ne.s32.totalorder %s34_s25, %s790_s10  ;;  %p796_p5 = scmp.lt.s32.totalorder %s790_s10, %s790_s10 }
   0xd   :  { %p797_p6 = por %p796_p5, %p795_p4 }
   0xf   :  { %p798_p7 = pnand %p797_p6, %p791_p3 }
  0x11   :  { %801 = shalt.err (!%p798_p7)
}
  0x12   :  { %s899_s11 = smov 64   ;;  %s900_s12 = smov 4  }
  0x13   :  { %39 = dma.hbm_to_vmem [thread:$0]  %s1084_s1, 1024, %s34_s25, [#allocation6], %s899_s11, %s899_s11, %s900_s12  }
  0x14   :  { %s901_s15 = smov [#allocation2]   ;;  %s802_s19 = scalar_lea.hbm %s1083_s0, 256 }
  0x15   :  { %s21_s16 = sshll.u32 %s901_s15, 4  ;;  %p803_p8 = scmp.ne.s32.totalorder %s1083_s0, %s802_s19  ;;  %s22_s16 = int_to_ptr.vmem [resolvable:$true] %s21_s16 }
  0x16   :  { %p806_p9 = scmp.lt.u32.totalorder %s802_s19, %s1083_s0 }
  0x18   :  { %p808_p10 = pnand %p806_p9, %p803_p8 }
  0x1a   :  { %811 = shalt.err (!%p808_p10)
}
  0x1b   :  { %s812_s24 = scalar_lea.vmem %s22_s16, 256  ;;  %p817_p12 = scmp.lt.s32.totalorder %s22_s16, %s22_s16 }
  0x1c   :  { %p813_p11 = scmp.ne.s32.totalorder %s22_s16, %s812_s24  ;;  %p818_p13 = scmp.lt.s32.totalorder %s812_s24, %s812_s24 }
  0x1e   :  { %p819_p0 = por %p818_p13, %p817_p12 }
  0x20   :  { %p820_p1 = pnand %p819_p0, %p813_p11 }
  0x22   :  { %823 = shalt.err (!%p820_p1)
}
  0x23   :  { %s902_s1 = smov 128   ;;  %s903_s25 = smov 8  }
  0x24   :  { %27 = dma.hbm_to_vmem [thread:$0]  %s1083_s0, 256, %s22_s16, [#allocation3], %s902_s1, %s902_s1, %s903_s25  }
  0x25   :  { %s904_s28 = smov [#allocation7]   ;;  %s905_s30 = smov [#allocation8]  }
  0x26   :  { %s47_s29 = sshll.u32 %s904_s28, 4  ;;  %s61_s8 = sshll.u32 %s905_s30, 4  ;;  %s48_s29 = int_to_ptr.vmem [resolvable:$true] %s47_s29  ;;  %s979_s8 = int_to_ptr.vmem [resolvable:$true] %s61_s8 }
  0x27   :  { %s824_s13 = scalar_lea.hbm %s1086_s3, 2048 }
  0x28   :  { %p825_p2 = scmp.ne.s32.totalorder %s1086_s3, %s824_s13  ;;  %p828_p3 = scmp.lt.u32.totalorder %s824_s13, %s1086_s3 }
  0x2a   :  { %p830_p4 = pnand %p828_p3, %p825_p2 }
  0x2c   :  { %833 = shalt.err (!%p830_p4)
}
  0x2d   :  { %s834_s0 = scalar_lea.vmem %s48_s29, 2048  ;;  %p839_p6 = scmp.lt.s32.totalorder %s48_s29, %s48_s29 }
  0x2e   :  { %p835_p5 = scmp.ne.s32.totalorder %s48_s29, %s834_s0  ;;  %p840_p7 = scmp.lt.s32.totalorder %s834_s0, %s834_s0 }
  0x30   :  { %p841_p8 = por %p840_p7, %p839_p6 }
  0x32   :  { %p842_p9 = pnand %p841_p8, %p835_p5 }
  0x34   :  { %845 = shalt.err (!%p842_p9)
}
  0x35   :  { %53 = dma.hbm_to_vmem [thread:$0]  %s1086_s3, 2048, %s48_s29, [#allocation6], %s899_s11, %s899_s11, %s900_s12  }
  0x36   :  { %s846_s22 = scalar_lea.hbm %s1088_s5, 1024 }
  0x37   :  { %p847_p10 = scmp.ne.s32.totalorder %s1088_s5, %s846_s22  ;;  %p850_p11 = scmp.lt.u32.totalorder %s846_s22, %s1088_s5 }
  0x39   :  { %p852_p12 = pnand %p850_p11, %p847_p10 }
  0x3b   :  { %855 = shalt.err (!%p852_p12)
}
  0x3c   :  { %s856_s28 = scalar_lea.vmem %s979_s8, 1024  ;;  %p861_p0 = scmp.lt.s32.totalorder %s979_s8, %s979_s8 }
  0x3d   :  { %p857_p13 = scmp.ne.s32.totalorder %s979_s8, %s856_s28  ;;  %p862_p1 = scmp.lt.s32.totalorder %s856_s28, %s856_s28 }
  0x3f   :  { %p863_p2 = por %p862_p1, %p861_p0 }
  0x41   :  { %p864_p3 = pnand %p863_p2, %p857_p13 }
  0x43   :  { %867 = shalt.err (!%p864_p3)
}
  0x44   :  { %67 = dma.hbm_to_vmem [thread:$0]  %s1088_s5, 1024, %s979_s8, [#allocation9], %s899_s11, %s899_s11, %s900_s12  }
  0x45   :  { %890 = dma.done.wait [#allocation3], 256  }
  0x46   :  { %891 = vsyncadd [#allocation3], 4294967040 }
  0x47   :  { %892 = dma.done.wait [#allocation6], 3072  }
  0x48   :  { %893 = vsyncadd [#allocation6], 4294964224 }
  0x49   :  { %894 = dma.done.wait [#allocation9], 1024  }
  0x4a   :  { %895 = vsyncadd [#allocation9], 4294966272  ;;  %v906_v0 = vmov 0.0   ;;  %vm907_vm0 = vmmov 0   ;;  %v740_v1 = vld [vmem:[#allocation5] sm:$0xff]   ;;  %v741_v2 = vld [vmem:[#allocation5 + $0x8] sm:$0xff]  }
  0x4b   :  { %649 = vmatprep.subr.bf16.mxu0 %v906_v0  ;;  %665 = vmatprep.mubr.msk.bf16.mxu0 %vm907_vm0, %v906_v0  ;;  %v742_v3 = vld [vmem:[#allocation5 + $0x10] sm:$0xff]   ;;  %v748_v4 = vld [vmem:[#allocation7] sm:$0xff]   ;;  %v743_v5 = vld [vmem:[#allocation5 + $0x18] sm:$0xff]  }
  0x4c   :  { %669 = vmatprep.subr.bf16.mxu1 %v906_v0  ;;  %685 = vmatprep.mubr.msk.bf16.mxu1 %vm907_vm0, %v906_v0  ;;  %v749_v6 = vld [vmem:[#allocation7 + $0x8] sm:$0xff]   ;;  %v744_v7 = vld [vmem:[#allocation5 + $0x20] sm:$0xff]   ;;  %v750_v8 = vld [vmem:[#allocation7 + $0x10] sm:$0xff]  }
  0x4d   :  { %650 = vmatpush3.bf16.msra.mxu0 %v740_v1  ;;  %670 = vmatpush3.bf16.msra.mxu1 %v748_v4  ;;  %v745_v9 = vld [vmem:[#allocation5 + $0x28] sm:$0xff]   ;;  %v751_v10 = vld [vmem:[#allocation7 + $0x18] sm:$0xff]   ;;  %v746_v11 = vld [vmem:[#allocation5 + $0x30] sm:$0xff]  }
  0x4e   :  { %651 = vmatprep.subr.bf16.mxu0 %v906_v0  ;;  %671 = vmatprep.subr.bf16.mxu1 %v906_v0  ;;  %v752_v12 = vld [vmem:[#allocation7 + $0x20] sm:$0xff]   ;;  %v747_v13 = vld [vmem:[#allocation5 + $0x38] sm:$0xff]   ;;  %v83_v14 = vld [vmem:[#allocation2] sm:$0xff] }
  0x4f   :  { %v84_v15 = vld [vmem:[#allocation2 + $0x8] sm:$0xff]  ;;  %v753_v16 = vld [vmem:[#allocation7 + $0x28] sm:$0xff]   ;;  %v754_v18 = vld [vmem:[#allocation7 + $0x30] sm:$0xff]  }
  0x50   :  { %v85_v17 = vpack.c.bf16 %v84_v15, %v83_v14  ;;  %v755_v19 = vld [vmem:[#allocation7 + $0x38] sm:$0xff]   ;;  %v756_v20 = vld [vmem:[#allocation7 + $0x40] sm:$0xff]   ;;  %v757_v21 = vld [vmem:[#allocation7 + $0x48] sm:$0xff]  }
  0x51   :  { %652 = vmatpush3.bf16.msra.mxu0 %v741_v2  ;;  %672 = vmatpush3.bf16.msra.mxu1 %v749_v6  ;;  %v758_v22 = vld [vmem:[#allocation7 + $0x50] sm:$0xff]   ;;  %v759_v23 = vld [vmem:[#allocation7 + $0x58] sm:$0xff]   ;;  %v760_v24 = vld [vmem:[#allocation7 + $0x60] sm:$0xff]  }
  0x52   :  { %653 = vmatprep.subr.bf16.mxu0 %v906_v0  ;;  %673 = vmatprep.subr.bf16.mxu1 %v906_v0  ;;  %v761_v25 = vld [vmem:[#allocation7 + $0x68] sm:$0xff]   ;;  %v576_v26 = vld [vmem:[%s1085_s2] ss:$0 sm:$0xff]  ;;  %v763_v37 = vld [vmem:[#allocation7 + $0x78] sm:$0xff]  }
  0x53   :  { %v762_v36 = vld [vmem:[#allocation7 + $0x70] sm:$0xff]   ;;  %v764_v38 = vld [vmem:[#allocation8] sm:$0xff]   ;;  %v765_v39 = vld [vmem:[#allocation8 + $0x8] sm:$0xff]  }
  0x54   :  { %v766_v40 = vld [vmem:[#allocation8 + $0x10] sm:$0xff]   ;;  %v767_v41 = vld [vmem:[#allocation8 + $0x18] sm:$0xff]   ;;  %v768_v42 = vld [vmem:[#allocation8 + $0x20] sm:$0xff]  }
  0x55   :  { %654 = vmatpush3.bf16.msra.mxu0 %v742_v3  ;;  %674 = vmatpush3.bf16.msra.mxu1 %v750_v8  ;;  %v769_v43 = vld [vmem:[#allocation8 + $0x28] sm:$0xff]   ;;  %v585_v44 = vld [vmem:[%s1087_s4] ss:$0 sm:$0xff]  ;;  %v771_v55 = vld [vmem:[#allocation8 + $0x38] sm:$0xff]  }
  0x56   :  { %655 = vmatprep.subr.bf16.mxu0 %v906_v0  ;;  %675 = vmatprep.subr.bf16.mxu1 %v906_v0  ;;  %v770_v54 = vld [vmem:[#allocation8 + $0x30] sm:$0xff]  }
  0x57   :  { %v595_v56 = vld [vmem:[%s1087_s4 + $0x1] ss:$0 sm:$0xff]  ;;  %s908_s4 = smov [#allocation10]  }
  0x59   :  { %656 = vmatpush3.bf16.msra.mxu0 %v743_v5  ;;  %676 = vmatpush3.bf16.msra.mxu1 %v751_v10 }
  0x5a   :  { %657 = vmatprep.subr.bf16.mxu0 %v906_v0  ;;  %677 = vmatprep.subr.bf16.mxu1 %v906_v0 }
  0x5d   :  { %658 = vmatpush3.bf16.msra.mxu0 %v744_v7  ;;  %678 = vmatpush3.bf16.msra.mxu1 %v752_v12 }
  0x5e   :  { %659 = vmatprep.subr.bf16.mxu0 %v906_v0  ;;  %679 = vmatprep.subr.bf16.mxu1 %v906_v0 }
  0x61   :  { %660 = vmatpush3.bf16.msra.mxu0 %v745_v9  ;;  %680 = vmatpush3.bf16.msra.mxu1 %v753_v16 }
  0x62   :  { %661 = vmatprep.subr.bf16.mxu0 %v906_v0  ;;  %681 = vmatprep.subr.bf16.mxu1 %v906_v0 }
  0x65   :  { %662 = vmatpush3.bf16.msra.mxu0 %v746_v11  ;;  %682 = vmatpush3.bf16.msra.mxu1 %v754_v18 }
  0x66   :  { %663 = vmatprep.subr.bf16.mxu0 %v906_v0  ;;  %683 = vmatprep.subr.bf16.mxu1 %v906_v0 }
  0x69   :  { %664 = vmatpush3.bf16.msra.mxu0 %v747_v13  ;;  %684 = vmatpush3.bf16.msra.mxu1 %v755_v19 }
  0x6a   :  { %689 = vmatprep.subr.bf16.mxu0 %v906_v0  ;;  %709 = vmatprep.subr.bf16.mxu1 %v906_v0 }
  0x6c   :  { %666 = vmatmul.mubr.bf16.vlgmr.msra.gmra.mrb[0].mxu0 %v85_v17 }
  0x6d   :  { %705 = vmatprep.mubr.msk.bf16.mxu0 %vm907_vm0, %v906_v0  ;;  %690 = vmatpush3.bf16.msra.mxu0 %v756_v20 }
  0x6e   :  { %691 = vmatprep.subr.bf16.mxu0 %v906_v0 }
  0x71   :  { %692 = vmatpush3.bf16.msra.mxu0 %v757_v21 }
  0x72   :  { %693 = vmatprep.subr.bf16.mxu0 %v906_v0 }
  0x75   :  { %694 = vmatpush3.bf16.msra.mxu0 %v758_v22 }
  0x76   :  { %695 = vmatprep.subr.bf16.mxu0 %v906_v0 }
  0x79   :  { %696 = vmatpush3.bf16.msra.mxu0 %v759_v23 }
  0x7a   :  { %697 = vmatprep.subr.bf16.mxu0 %v906_v0 }
  0x7d   :  { %698 = vmatpush3.bf16.msra.mxu0 %v760_v24 }
  0x7e   :  { %699 = vmatprep.subr.bf16.mxu0 %v906_v0 }
  0x81   :  { %700 = vmatpush3.bf16.msra.mxu0 %v761_v25 }
  0x82   :  { %701 = vmatprep.subr.bf16.mxu0 %v906_v0 }
  0x85   :  { %702 = vmatpush3.bf16.msra.mxu0 %v762_v36 }
  0x86   :  { %703 = vmatprep.subr.bf16.mxu0 %v906_v0 }
  0x89   :  { %704 = vmatpush3.bf16.msra.mxu0 %v763_v37 }
 0x13f   :  { %v191_v27 = vpop.f32.mrb[0].mxu0 }
 0x140   :  { %v192_v28 = vadd.f32 %v576_v26, %v191_v27  ;;  %v667_v29 = vpop.f32.mrb[1].mxu0 }
 0x141   :  { %v194_v30 = vpop.f32.mrb[2].mxu0 }
 0x142   :  { %v195_v31 = vadd.f32 %v576_v26, %v194_v30  ;;  %v668_v32 = vpop.f32.mrb[3].mxu0  ;;  %v198_v33 = vmax.f32 %v192_v28, 0.0 }
 0x144   :  { %v199_v34 = vmax.f32 %v195_v31, 0.0 }
 0x146   :  { %v200_v35 = vpack.c.bf16 %v199_v34, %v198_v33 }
 0x148   :  { %686 = vmatmul.mubr.bf16.vlgmr.msra.gmra.mrb[0].mxu1 %v200_v35 }
 0x149   :  { %725 = vmatprep.mubr.msk.bf16.mxu1 %vm907_vm0, %v906_v0  ;;  %710 = vmatpush3.bf16.msra.mxu1 %v764_v38 }
 0x14a   :  { %711 = vmatprep.subr.bf16.mxu1 %v906_v0 }
 0x14d   :  { %712 = vmatpush3.bf16.msra.mxu1 %v765_v39 }
 0x14e   :  { %713 = vmatprep.subr.bf16.mxu1 %v906_v0 }
 0x151   :  { %714 = vmatpush3.bf16.msra.mxu1 %v766_v40 }
 0x152   :  { %715 = vmatprep.subr.bf16.mxu1 %v906_v0 }
 0x155   :  { %716 = vmatpush3.bf16.msra.mxu1 %v767_v41 }
 0x156   :  { %717 = vmatprep.subr.bf16.mxu1 %v906_v0 }
 0x159   :  { %718 = vmatpush3.bf16.msra.mxu1 %v768_v42 }
 0x15a   :  { %719 = vmatprep.subr.bf16.mxu1 %v906_v0 }
 0x15d   :  { %720 = vmatpush3.bf16.msra.mxu1 %v769_v43 }
 0x15e   :  { %721 = vmatprep.subr.bf16.mxu1 %v906_v0 }
 0x161   :  { %722 = vmatpush3.bf16.msra.mxu1 %v770_v54 }
 0x162   :  { %723 = vmatprep.subr.bf16.mxu1 %v906_v0  ;;  %v604_v0 = vld [vmem:[%s1089_s6] ss:$0 sm:$0xff]  ;;  %s562_s6 = sshll.u32 %s908_s4, 4  ;;  %s563_s6 = int_to_ptr.vmem [resolvable:$true] %s562_s6 }
 0x163   :  { %s868_s13 = scalar_lea.vmem %s563_s6, 256  ;;  %p873_p5 = scmp.lt.s32.totalorder %s563_s6, %s563_s6 }
 0x164   :  { %p869_p4 = scmp.ne.s32.totalorder %s563_s6, %s868_s13  ;;  %p874_p6 = scmp.lt.s32.totalorder %s868_s13, %s868_s13 }
 0x165   :  { %724 = vmatpush3.bf16.msra.mxu1 %v771_v55 }
 0x166   :  { %p875_p7 = por %p874_p6, %p873_p5 }
 0x168   :  { %p876_p8 = pnand %p875_p7, %p869_p4 }
 0x21b   :  { %v306_v45 = vpop.f32.mrb[0].mxu1 }
 0x21c   :  { %v307_v46 = vadd.f32 %v585_v44, %v306_v45  ;;  %v687_v47 = vpop.f32.mrb[1].mxu1 }
 0x21d   :  { %v309_v48 = vpop.f32.mrb[2].mxu1 }
 0x21e   :  { %v310_v49 = vadd.f32 %v585_v44, %v309_v48  ;;  %v688_v50 = vpop.f32.mrb[3].mxu1  ;;  %v313_v51 = vmax.f32 %v307_v46, 0.0 }
 0x220   :  { %v314_v52 = vmax.f32 %v310_v49, 0.0 }
 0x222   :  { %v315_v53 = vpack.c.bf16 %v314_v52, %v313_v51 }
 0x224   :  { %706 = vmatmul.mubr.bf16.vlgmr.msra.gmra.mrb[4].mxu0 %v315_v53 }
 0x2f7   :  { %v423_v57 = vpop.f32.mrb[4].mxu0 }
 0x2f8   :  { %v424_v58 = vadd.f32 %v595_v56, %v423_v57  ;;  %v707_v59 = vpop.f32.mrb[5].mxu0 }
 0x2f9   :  { %v426_v60 = vpop.f32.mrb[6].mxu0 }
 0x2fa   :  { %v427_v61 = vadd.f32 %v595_v56, %v426_v60  ;;  %v708_v62 = vpop.f32.mrb[7].mxu0  ;;  %v430_v63 = vmax.f32 %v424_v58, 0.0 }
 0x2fc   :  { %v431_v1 = vmax.f32 %v427_v61, 0.0 }
 0x2fe   :  { %v432_v2 = vpack.c.bf16 %v431_v1, %v430_v63 }
 0x300   :  { %726 = vmatmul.mubr.bf16.vlgmr.msra.gmra.mrb[4].mxu1 %v432_v2 }
 0x3d3   :  { %v538_v3 = vpop.f32.mrb[4].mxu1 }
 0x3d4   :  { %v539_v4 = vadd.f32 %v604_v0, %v538_v3  ;;  %v727_v5 = vpop.f32.mrb[5].mxu1 }
 0x3d5   :  { %v541_v6 = vpop.f32.mrb[6].mxu1 }
 0x3d6   :  { %v545_v7 = vsub.f32 0.0, %v539_v4  ;;  %v542_v8 = vadd.f32 %v604_v0, %v541_v6  ;;  %v728_v9 = vpop.f32.mrb[7].mxu1 }
 0x3d8   :  { %v547_v10 = vmul.f32 1.442695, %v545_v7  ;;  %v546_v11 = vsub.f32 0.0, %v542_v8 }
 0x3da   :  { %772 = vpow2.f32 %v547_v10  ;;  %v549_v12 = vmul.f32 1.442695, %v546_v11 }
 0x3dc   :  { %774 = vpow2.f32 %v549_v12 }
 0x3e4   :  { %v773_v13 = vpop.eup %772 }
 0x3e5   :  { %v551_v14 = vadd.f32 1.0, %v773_v13 }
 0x3e6   :  { %v775_v15 = vpop.eup %774 }
 0x3e7   :  { %776 = vrcp.f32 %v551_v14  ;;  %v552_v16 = vadd.f32 1.0, %v775_v15 }
 0x3e9   :  { %778 = vrcp.f32 %v552_v16 }
 0x3f1   :  { %v777_v17 = vpop.eup %776 }
 0x3f2   :  { %555 = vst [vmem:[#allocation10] sm:$0xff] %v777_v17 }
 0x3f3   :  { %v779_v18 = vpop.eup %778 }
 0x3f4   :  { %556 = vst [vmem:[#allocation10 + $0x8] sm:$0xff] %v779_v18 }
 0x3f5   :  { %879 = shalt.err (!%p876_p8)
}
 0x3f6   :  { %s880_s17 = scalar_lea.hbm %s1090_s7, 256 }
 0x3f7   :  { %p881_p9 = scmp.ne.s32.totalorder %s1090_s7, %s880_s17  ;;  %p884_p10 = scmp.lt.u32.totalorder %s880_s17, %s1090_s7 }
 0x3f9   :  { %p886_p11 = pnand %p884_p10, %p881_p9 }
 0x3fb   :  { %889 = shalt.err (!%p886_p11)
}
 0x3fc   :  { %568 = dma.vmem_to_hbm [thread:$0]  %s563_s6, 256, %s1090_s7, [#allocation4], %s902_s1, %s902_s1, %s903_s25  }
 0x3fd   :  { %896 = dma.done.wait [#allocation4], 256  }
 0x3fe   :  { %897 = vsyncadd [#allocation4], 4294967040 }
 0x3ff   :  { %572 = vsyncpa [#allocation3], 1 }
 0x400   :  { %573 = vsyncpa [#allocation6], 1 }
 0x401   :  { %574 = vsyncpa [#allocation9], 1 }
 0x402   :  { %575 = vsyncpa [#allocation4], 1 }

</bundles_post_ra>
